<compile_context>
chip_gen: v6e
topology: v6e:2x2x1
jax: 0.10.0
libtpu: 0.0.40
codegen_flags: <defaults>
</compile_context>

<pallas_src>
import functools

import jax
import jax.numpy as jnp
import numpy as np
from jax import lax
from jax.experimental import pallas as pl
from jax.experimental.pallas import tpu as pltpu

_LANE = 128


def _round_up(v, m):
    return (v + m - 1) // m * m


def _pad_to(a, shape):
    return jnp.pad(a, [(0, s - d) for d, s in zip(a.shape, shape)])


def _const_spec(shape, index_map):
    """BlockSpec for a block whose index_map is constant over the grid.

    Single-buffered (Buffered(1)): double-buffering a never-changing block
    doubles its VMEM footprint for zero benefit. Falls back gracefully on JAX
    versions without pipeline_mode support.
    """
    try:
        return pl.BlockSpec(shape, index_map, pipeline_mode=pl.Buffered(1))
    except (TypeError, AttributeError):
        return pl.BlockSpec(shape, index_map)


# -----------------------------------------------------------------------------
# Parameter preparation (run ONCE, outside the jitted inference loop).
# -----------------------------------------------------------------------------
def prepare_params(params, *, compute_dtype=jnp.bfloat16, lane=_LANE):
    """Pad feature dims to 128-lane multiples and cast weights to compute dtype.

    params (all f32, (in_features, out_features) weight layout):
      w_in : (input_dim, hidden)      b_in : (hidden,)
      w1   : (L, hidden, hidden)      b1   : (L, hidden)
      w2   : (L, hidden, hidden)      b2   : (L, hidden)
      w_out: (hidden, output_dim)     b_out: (output_dim,)

    The input feature dim of w_in is left UNpadded (x is streamed unpadded).
    Biases stay f32. Padded rows/cols are zero, so they never contaminate real
    outputs. Returns a dict of arrays only (jit-friendly pytree).
    """
    cd = compute_dtype
    f32 = jnp.float32
    w_in, b_in = params["w_in"], params["b_in"]
    w1, b1, w2, b2 = params["w1"], params["b1"], params["w2"], params["b2"]
    w_out, b_out = params["w_out"], params["b_out"]

    d_in, hidden = w_in.shape
    L = w1.shape[0]
    d_out = w_out.shape[1]
    h_p = _round_up(hidden, lane)
    d_out_p = _round_up(d_out, lane)

    return {
        "w_in": _pad_to(w_in.astype(cd), (d_in, h_p)),
        "w1": _pad_to(w1.astype(cd), (L, h_p, h_p)),
        "w2": _pad_to(w2.astype(cd), (L, h_p, h_p)),
        "w_out": _pad_to(w_out.astype(cd), (h_p, d_out_p)),
        "b_in": _pad_to(b_in.astype(f32).reshape(1, hidden), (1, h_p)),
        "b1": _pad_to(b1.astype(f32).reshape(L, 1, hidden), (L, 1, h_p)),
        "b2": _pad_to(b2.astype(f32).reshape(L, 1, hidden), (L, 1, h_p)),
        "b_out": _pad_to(b_out.astype(f32).reshape(1, d_out), (1, d_out_p)),
    }


# -----------------------------------------------------------------------------
# Kernels
# -----------------------------------------------------------------------------
def _resident_kernel(x_ref, w_in_ref, b_in_ref, w1_ref, b1_ref, w2_ref, b2_ref,
                     w_out_ref, b_out_ref, o_ref, *, num_layers, compute_dtype,
                     fori_unroll):
    """All weights resident in VMEM; one grid step = one batch tile."""
    f32 = jnp.float32
    cd = compute_dtype

    # Initial Linear: [tb, Din] @ [Din, H_p] -> f32 accumulator (+ f32 bias).
    h = jnp.dot(x_ref[...], w_in_ref[...], preferred_element_type=f32)
    h = h + b_in_ref[...]

    def block(l_w1, l_b1, l_w2, l_b2, h):
        # ReLU after the bf16 cast: numerically identical, half the VPU work
        # on bf16-capable VALUs (v6e / v7x).
        t = jnp.maximum(h.astype(cd), 0)
        t = jnp.dot(t, l_w1, preferred_element_type=f32) + l_b1
        t = jnp.maximum(t.astype(cd), 0)
        t = jnp.dot(t, l_w2, preferred_element_type=f32) + l_b2
        return h + t

    if num_layers <= 8:
        # Small L: full static unroll so the LLO scheduler can interleave
        # adjacent layers' MXU / VPU work.
        for l in range(num_layers):
            h = block(w1_ref[l], b1_ref[l], w2_ref[l], b2_ref[l], h)
    else:
        # Large L: bounded live ranges / code size via fori_loop with dynamic
        # layer indexing into the stacked weight refs.
        def body(l, h):
            return block(w1_ref[l], b1_ref[l], w2_ref[l], b2_ref[l], h)
        h = lax.fori_loop(0, num_layers, body, h, unroll=fori_unroll)

    # Final Linear: [tb, H_p] @ [H_p, Dout_p]; lane-dense store.
    out = jnp.dot(h.astype(cd), w_out_ref[...], preferred_element_type=f32)
    out = out + b_out_ref[...]
    o_ref[...] = out.astype(o_ref.dtype)


def _streaming_kernel(x_ref, w_in_ref, b_in_ref, w1_ref, b1_ref, w2_ref, b2_ref,
                      w_out_ref, b_out_ref, o_ref, h_ref, *, compute_dtype):
    """Layer-streaming path: grid = (batch tiles, layers).

    Per-layer weights are streamed (double-buffered) one layer at a time; the
    running activation h lives in an f32 VMEM scratch that persists across the
    layer axis. Caps weight VMEM at ~2 layers regardless of L (needed on
    v7x's 64 MiB / v5e's small scoped default for large hidden/L).
    """
    f32 = jnp.float32
    cd = compute_dtype
    l = pl.program_id(1)

    @pl.when(l == 0)
    def _():
        h0 = jnp.dot(x_ref[...], w_in_ref[...], preferred_element_type=f32)
        h_ref[...] = h0 + b_in_ref[...]

    h = h_ref[...]
    t = jnp.maximum(h.astype(cd), 0)
    t = jnp.dot(t, w1_ref[0], preferred_element_type=f32) + b1_ref[0]
    t = jnp.maximum(t.astype(cd), 0)
    t = jnp.dot(t, w2_ref[0], preferred_element_type=f32) + b2_ref[0]
    h_ref[...] = h + t

    @pl.when(l == pl.num_programs(1) - 1)
    def _():
        out = jnp.dot(h_ref[...].astype(cd), w_out_ref[...],
                      preferred_element_type=f32)
        o_ref[...] = (out + b_out_ref[...]).astype(o_ref.dtype)


# -----------------------------------------------------------------------------
# Wrapper
# -----------------------------------------------------------------------------
def regression_net_forward(x, prep, *, out_features, block_batch=128,
                           compute_dtype=jnp.bfloat16, out_dtype=jnp.float32,
                           mode="auto", fori_unroll=2,
                           resident_weight_budget=48 << 20):
    """Fused ResidualNet forward.

    x    : (B, input_dim) — passed with its real (unpadded) feature dim.
    prep : output of prepare_params() (pad/cast once, reuse across calls).
    out_features : real (unpadded) output dim, used to slice the lane-dense
                   output slab.
    out_dtype : set to jnp.bfloat16 if the consumer tolerates it — halves the
                (mostly padding) output writeback stream.
    mode : "auto" | "resident" | "streaming". "auto" keeps all weights
           resident in VMEM when they fit (fast path) and otherwise streams
           them layer-by-layer over a second grid axis.
    """
    cd = compute_dtype
    f32_b = 4
    cd_b = jnp.dtype(cd).itemsize
    out_b = jnp.dtype(out_dtype).itemsize

    w_in, b_in = prep["w_in"], prep["b_in"]
    w1, b1, w2, b2 = prep["w1"], prep["b1"], prep["w2"], prep["b2"]
    w_out, b_out = prep["w_out"], prep["b_out"]

    B, d_in = x.shape
    L, h_p, _ = w1.shape
    d_out_p = w_out.shape[1]
    d_out = out_features

    # --- batch tiling -------------------------------------------------------
    sub = 16 if cd == jnp.bfloat16 else 8
    block_batch = max(sub, _round_up(block_batch, sub))        # sublane-safe
    # Cap the tile at ~half the batch so the "parallel" batch axis has >=2
    # grid steps whenever possible (keeps both v7x TensorCores busy).
    half_b = _round_up(max((B + 1) // 2, 1), sub)
    tile_b = min(block_batch, half_b)
    b_p = _round_up(B, tile_b)
    num_b = b_p // tile_b

    x = x.astype(cd)
    if b_p != B:
        # Batch-only pad (feature dim stays unpadded); padded rows are sliced
        # off after the call and never contaminate real rows.
        x = jnp.pad(x, ((0, b_p - B), (0, 0)))

    # --- mode selection -----------------------------------------------------
    resident_weight_bytes = (w_in.size + w1.size + w2.size + w_out.size) * cd_b
    bias_bytes = (b_in.size + b1.size + b2.size + b_out.size) * f32_b
    if mode == "auto":
        mode = ("resident" if resident_weight_bytes <= resident_weight_budget
                else "streaming")

    flops = 2 * b_p * (d_in * h_p + L * 2 * h_p * h_p + h_p * d_out_p)
    bytes_accessed = int(x.size * cd_b + resident_weight_bytes + bias_bytes
                         + b_p * d_out_p * out_b)

    io_tile_bytes = 2 * tile_b * d_in * cd_b + 2 * tile_b * d_out_p * out_b

    if mode == "resident":
        grid = (num_b,)
        in_specs = [
            pl.BlockSpec((tile_b, d_in), lambda i: (i, 0)),       # streamed x
            _const_spec((d_in, h_p), lambda i: (0, 0)),           # w_in
            _const_spec((1, h_p), lambda i: (0, 0)),              # b_in (f32)
            _const_spec((L, h_p, h_p), lambda i: (0, 0, 0)),      # stacked w1
            _const_spec((L, 1, h_p), lambda i: (0, 0, 0)),        # stacked b1
            _const_spec((L, h_p, h_p), lambda i: (0, 0, 0)),      # stacked w2
            _const_spec((L, 1, h_p), lambda i: (0, 0, 0)),        # stacked b2
            _const_spec((h_p, d_out_p), lambda i: (0, 0)),        # w_out
            _const_spec((1, d_out_p), lambda i: (0, 0)),          # b_out (f32)
        ]
        out_spec = pl.BlockSpec((tile_b, d_out_p), lambda i: (i, 0))
        scratch = []
        kernel = functools.partial(_resident_kernel, num_layers=L,
                                   compute_dtype=cd, fori_unroll=fori_unroll)
        dim_sem = ("parallel",)
        # Single-buffered weights + f32 biases + double-buffered x/out tiles
        # + f32 activation working set + margin.
        vmem_bytes = (resident_weight_bytes + bias_bytes + io_tile_bytes
                      + 4 * tile_b * h_p * f32_b + (2 << 20))
    else:
        grid = (num_b, L)
        in_specs = [
            pl.BlockSpec((tile_b, d_in), lambda i, l: (i, 0)),
            _const_spec((d_in, h_p), lambda i, l: (0, 0)),
            _const_spec((1, h_p), lambda i, l: (0, 0)),
            pl.BlockSpec((1, h_p, h_p), lambda i, l: (l, 0, 0)),  # per-layer w1
            pl.BlockSpec((1, 1, h_p), lambda i, l: (l, 0, 0)),
            pl.BlockSpec((1, h_p, h_p), lambda i, l: (l, 0, 0)),  # per-layer w2
            pl.BlockSpec((1, 1, h_p), lambda i, l: (l, 0, 0)),
            _const_spec((h_p, d_out_p), lambda i, l: (0, 0)),
            _const_spec((1, d_out_p), lambda i, l: (0, 0)),
        ]
        out_spec = pl.BlockSpec((tile_b, d_out_p), lambda i, l: (i, 0))
        scratch = [pltpu.VMEM((tile_b, h_p), jnp.float32)]        # resident h
        kernel = functools.partial(_streaming_kernel, compute_dtype=cd)
        dim_sem = ("parallel", "arbitrary")
        per_layer_w = 2 * h_p * h_p * cd_b                        # w1 + w2
        vmem_bytes = (2 * per_layer_w * 2                         # double-buffered
                      + (w_in.size + w_out.size) * cd_b + bias_bytes
                      + io_tile_bytes
                      + tile_b * h_p * f32_b                      # h scratch
                      + 3 * tile_b * h_p * f32_b + (2 << 20))

    vmem_limit = int(min(max(vmem_bytes, 16 << 20), 128 << 20))

    out_padded = pl.pallas_call(
        kernel,
        out_shape=jax.ShapeDtypeStruct((b_p, d_out_p), out_dtype),
        grid_spec=pltpu.PrefetchScalarGridSpec(
            num_scalar_prefetch=0,
            grid=grid,
            in_specs=in_specs,
            out_specs=out_spec,
            scratch_shapes=scratch,
        ),
        compiler_params=pltpu.CompilerParams(
            dimension_semantics=dim_sem,
            vmem_limit_bytes=vmem_limit,
        ),
        cost_estimate=pl.CostEstimate(
            flops=flops, transcendentals=0, bytes_accessed=bytes_accessed),
    )(x, w_in, b_in, w1, b1, w2, b2, w_out, b_out)

    return out_padded[:B, :d_out]


# -----------------------------------------------------------------------------
# Pure-JAX reference (same dtype rules: bf16 matmuls, f32 accum, f32 biases)
# -----------------------------------------------------------------------------
def regression_net_reference(x, params, compute_dtype=jnp.bfloat16):
    cd = compute_dtype
    f32 = jnp.float32
    h = jnp.dot(x.astype(cd), params["w_in"].astype(cd),
                preferred_element_type=f32)
    h = h + params["b_in"].astype(f32)
    L = params["w1"].shape[0]
    for l in range(L):
        t = jnp.maximum(h.astype(cd), 0)
        t = jnp.dot(t, params["w1"][l].astype(cd), preferred_element_type=f32)
        t = t + params["b1"][l].astype(f32)
        t = jnp.maximum(t.astype(cd), 0)
        t = jnp.dot(t, params["w2"][l].astype(cd), preferred_element_type=f32)
        t = t + params["b2"][l].astype(f32)
        h = h + t
    out = jnp.dot(h.astype(cd), params["w_out"].astype(cd),
                  preferred_element_type=f32)
    return out + params["b_out"].astype(f32)


if __name__ == "__main__":
    key = jax.random.PRNGKey(0)
    B, input_dim, hidden, output_dim, num_layers = 64, 12, 32, 3, 3
    ks = jax.random.split(key, 9)

    x = jax.random.normal(ks[0], (B, input_dim), jnp.float32)
    params = {
        "w_in": jax.random.normal(ks[1], (input_dim, hidden), jnp.float32) * 0.3,
        "b_in": jax.random.normal(ks[2], (hidden,), jnp.float32) * 0.1,
        "w1": jax.random.normal(ks[3], (num_layers, hidden, hidden), jnp.float32) * 0.2,
        "b1": jax.random.normal(ks[4], (num_layers, hidden), jnp.float32) * 0.1,
        "w2": jax.random.normal(ks[5], (num_layers, hidden, hidden), jnp.float32) * 0.2,
        "b2": jax.random.normal(ks[6], (num_layers, hidden), jnp.float32) * 0.1,
        "w_out": jax.random.normal(ks[7], (hidden, output_dim), jnp.float32) * 0.3,
        "b_out": jax.random.normal(ks[8], (output_dim,), jnp.float32) * 0.1,
    }

    # Pad / cast parameters ONCE, outside the jitted forward.
    prep = jax.tree_util.tree_map(jax.device_put, prepare_params(params))

    ref = jax.block_until_ready(regression_net_reference(x, params))

    # Exercise both the fully-resident fast path and the layer-streaming
    # fallback (used automatically when the weight stack would not fit VMEM).
    for mode in ("resident", "streaming"):
        fwd = jax.jit(functools.partial(
            regression_net_forward, out_features=output_dim, mode=mode))
        out = jax.block_until_ready(fwd(x, prep))
        assert out.shape == (B, output_dim)
        np.testing.assert_allclose(np.asarray(out), np.asarray(ref),
                                   rtol=3e-2, atol=3e-2)

    print("KERNEL_OK")
</pallas_src>

<mosaic_0001>
module attributes {stable_mosaic.version = 11 : i64} {
  func.func @_resident_kernel(%arg0: i32, %arg1: memref<32x12xbf16, #tpu.memory_space<vmem>>, %arg2: memref<12x128xbf16, #tpu.memory_space<vmem>>, %arg3: memref<1x128xf32, #tpu.memory_space<vmem>>, %arg4: memref<3x128x128xbf16, #tpu.memory_space<vmem>>, %arg5: memref<3x1x128xf32, #tpu.memory_space<vmem>>, %arg6: memref<3x128x128xbf16, #tpu.memory_space<vmem>>, %arg7: memref<3x1x128xf32, #tpu.memory_space<vmem>>, %arg8: memref<128x128xbf16, #tpu.memory_space<vmem>>, %arg9: memref<1x128xf32, #tpu.memory_space<vmem>>, %arg10: memref<32x128xf32, #tpu.memory_space<vmem>>) attributes {dimension_semantics = [#tpu.dimension_semantics<parallel>], iteration_bounds = array<i64: 2>, scalar_prefetch = 0 : i64, scratch_operands = 0 : i64, tpu.core_type = #tpu.core_type<tc>, window_params = [{transform_indices = @transform_0, window_bounds = array<i64: 32, 12>}, {pipeline_mode = #tpu.pipeline_mode<synchronous>, transform_indices = @transform_1, window_bounds = array<i64: 12, 128>}, {pipeline_mode = #tpu.pipeline_mode<synchronous>, transform_indices = @transform_2, window_bounds = array<i64: 1, 128>}, {pipeline_mode = #tpu.pipeline_mode<synchronous>, transform_indices = @transform_3, window_bounds = array<i64: 3, 128, 128>}, {pipeline_mode = #tpu.pipeline_mode<synchronous>, transform_indices = @transform_4, window_bounds = array<i64: 3, 1, 128>}, {pipeline_mode = #tpu.pipeline_mode<synchronous>, transform_indices = @transform_5, window_bounds = array<i64: 3, 128, 128>}, {pipeline_mode = #tpu.pipeline_mode<synchronous>, transform_indices = @transform_6, window_bounds = array<i64: 3, 1, 128>}, {pipeline_mode = #tpu.pipeline_mode<synchronous>, transform_indices = @transform_7, window_bounds = array<i64: 128, 128>}, {pipeline_mode = #tpu.pipeline_mode<synchronous>, transform_indices = @transform_8, window_bounds = array<i64: 1, 128>}, {transform_indices = @transform_9, window_bounds = array<i64: 32, 128>}]} {
    %c0 = arith.constant 0 : index
    %c0_0 = arith.constant 0 : index
    %0 = vector.load %arg1[%c0, %c0_0] : memref<32x12xbf16, #tpu.memory_space<vmem>>, vector<32x12xbf16>
    %c0_1 = arith.constant 0 : index
    %c0_2 = arith.constant 0 : index
    %1 = vector.load %arg2[%c0_1, %c0_2] : memref<12x128xbf16, #tpu.memory_space<vmem>>, vector<12x128xbf16>
    %cst = arith.constant dense<0.000000e+00> : vector<32x128xf32>
    %2 = tpu.matmul %0, %1, %cst {dimension_numbers = #tpu.dot_dimension_numbers<[1], [0], [0], [1], [0, 0, 1, 1], [], []>} : vector<32x12xbf16>, vector<12x128xbf16>, vector<32x128xf32> -> vector<32x128xf32>
    %c0_3 = arith.constant 0 : index
    %c0_4 = arith.constant 0 : index
    %3 = vector.load %arg3[%c0_3, %c0_4] : memref<1x128xf32, #tpu.memory_space<vmem>>, vector<1x128xf32>
    %4 = vector.broadcast %3 : vector<1x128xf32> to vector<32x128xf32>
    %5 = arith.addf %2, %4 : vector<32x128xf32>
    %c0_5 = arith.constant 0 : index
    %c0_6 = arith.constant 0 : index
    %c0_7 = arith.constant 0 : index
    %6 = vector.load %arg4[%c0_5, %c0_6, %c0_7] : memref<3x128x128xbf16, #tpu.memory_space<vmem>>, vector<1x128x128xbf16>
    %7 = vector.shape_cast %6 : vector<1x128x128xbf16> to vector<128x128xbf16>
    %c0_8 = arith.constant 0 : index
    %c0_9 = arith.constant 0 : index
    %c0_10 = arith.constant 0 : index
    %8 = vector.load %arg5[%c0_8, %c0_9, %c0_10] : memref<3x1x128xf32, #tpu.memory_space<vmem>>, vector<1x1x128xf32>
    %9 = vector.shape_cast %8 : vector<1x1x128xf32> to vector<1x128xf32>
    %c0_11 = arith.constant 0 : index
    %c0_12 = arith.constant 0 : index
    %c0_13 = arith.constant 0 : index
    %10 = vector.load %arg6[%c0_11, %c0_12, %c0_13] : memref<3x128x128xbf16, #tpu.memory_space<vmem>>, vector<1x128x128xbf16>
    %11 = vector.shape_cast %10 : vector<1x128x128xbf16> to vector<128x128xbf16>
    %c0_14 = arith.constant 0 : index
    %c0_15 = arith.constant 0 : index
    %c0_16 = arith.constant 0 : index
    %12 = vector.load %arg7[%c0_14, %c0_15, %c0_16] : memref<3x1x128xf32, #tpu.memory_space<vmem>>, vector<1x1x128xf32>
    %13 = vector.shape_cast %12 : vector<1x1x128xf32> to vector<1x128xf32>
    %14 = arith.truncf %5 : vector<32x128xf32> to vector<32x128xbf16>
    %cst_17 = arith.constant 0.000000e+00 : bf16
    %15 = vector.broadcast %cst_17 : bf16 to vector<32x128xbf16>
    %16 = arith.maximumf %14, %15 : vector<32x128xbf16>
    %cst_18 = arith.constant dense<0.000000e+00> : vector<32x128xf32>
    %17 = tpu.matmul %16, %7, %cst_18 {dimension_numbers = #tpu.dot_dimension_numbers<[1], [0], [0], [1], [0, 0, 1, 1], [], []>} : vector<32x128xbf16>, vector<128x128xbf16>, vector<32x128xf32> -> vector<32x128xf32>
    %18 = vector.broadcast %9 : vector<1x128xf32> to vector<32x128xf32>
    %19 = arith.addf %17, %18 : vector<32x128xf32>
    %20 = arith.truncf %19 : vector<32x128xf32> to vector<32x128xbf16>
    %cst_19 = arith.constant 0.000000e+00 : bf16
    %21 = vector.broadcast %cst_19 : bf16 to vector<32x128xbf16>
    %22 = arith.maximumf %20, %21 : vector<32x128xbf16>
    %cst_20 = arith.constant dense<0.000000e+00> : vector<32x128xf32>
    %23 = tpu.matmul %22, %11, %cst_20 {dimension_numbers = #tpu.dot_dimension_numbers<[1], [0], [0], [1], [0, 0, 1, 1], [], []>} : vector<32x128xbf16>, vector<128x128xbf16>, vector<32x128xf32> -> vector<32x128xf32>
    %24 = vector.broadcast %13 : vector<1x128xf32> to vector<32x128xf32>
    %25 = arith.addf %23, %24 : vector<32x128xf32>
    %26 = arith.addf %5, %25 : vector<32x128xf32>
    %c1 = arith.constant 1 : index
    %c0_21 = arith.constant 0 : index
    %c0_22 = arith.constant 0 : index
    %27 = vector.load %arg4[%c1, %c0_21, %c0_22] : memref<3x128x128xbf16, #tpu.memory_space<vmem>>, vector<1x128x128xbf16>
    %28 = vector.shape_cast %27 : vector<1x128x128xbf16> to vector<128x128xbf16>
    %c1_23 = arith.constant 1 : index
    %c0_24 = arith.constant 0 : index
    %c0_25 = arith.constant 0 : index
    %29 = vector.load %arg5[%c1_23, %c0_24, %c0_25] : memref<3x1x128xf32, #tpu.memory_space<vmem>>, vector<1x1x128xf32>
    %30 = vector.shape_cast %29 : vector<1x1x128xf32> to vector<1x128xf32>
    %c1_26 = arith.constant 1 : index
    %c0_27 = arith.constant 0 : index
    %c0_28 = arith.constant 0 : index
    %31 = vector.load %arg6[%c1_26, %c0_27, %c0_28] : memref<3x128x128xbf16, #tpu.memory_space<vmem>>, vector<1x128x128xbf16>
    %32 = vector.shape_cast %31 : vector<1x128x128xbf16> to vector<128x128xbf16>
    %c1_29 = arith.constant 1 : index
    %c0_30 = arith.constant 0 : index
    %c0_31 = arith.constant 0 : index
    %33 = vector.load %arg7[%c1_29, %c0_30, %c0_31] : memref<3x1x128xf32, #tpu.memory_space<vmem>>, vector<1x1x128xf32>
    %34 = vector.shape_cast %33 : vector<1x1x128xf32> to vector<1x128xf32>
    %35 = arith.truncf %26 : vector<32x128xf32> to vector<32x128xbf16>
    %cst_32 = arith.constant 0.000000e+00 : bf16
    %36 = vector.broadcast %cst_32 : bf16 to vector<32x128xbf16>
    %37 = arith.maximumf %35, %36 : vector<32x128xbf16>
    %cst_33 = arith.constant dense<0.000000e+00> : vector<32x128xf32>
    %38 = tpu.matmul %37, %28, %cst_33 {dimension_numbers = #tpu.dot_dimension_numbers<[1], [0], [0], [1], [0, 0, 1, 1], [], []>} : vector<32x128xbf16>, vector<128x128xbf16>, vector<32x128xf32> -> vector<32x128xf32>
    %39 = vector.broadcast %30 : vector<1x128xf32> to vector<32x128xf32>
    %40 = arith.addf %38, %39 : vector<32x128xf32>
    %41 = arith.truncf %40 : vector<32x128xf32> to vector<32x128xbf16>
    %cst_34 = arith.constant 0.000000e+00 : bf16
    %42 = vector.broadcast %cst_34 : bf16 to vector<32x128xbf16>
    %43 = arith.maximumf %41, %42 : vector<32x128xbf16>
    %cst_35 = arith.constant dense<0.000000e+00> : vector<32x128xf32>
    %44 = tpu.matmul %43, %32, %cst_35 {dimension_numbers = #tpu.dot_dimension_numbers<[1], [0], [0], [1], [0, 0, 1, 1], [], []>} : vector<32x128xbf16>, vector<128x128xbf16>, vector<32x128xf32> -> vector<32x128xf32>
    %45 = vector.broadcast %34 : vector<1x128xf32> to vector<32x128xf32>
    %46 = arith.addf %44, %45 : vector<32x128xf32>
    %47 = arith.addf %26, %46 : vector<32x128xf32>
    %c2 = arith.constant 2 : index
    %c0_36 = arith.constant 0 : index
    %c0_37 = arith.constant 0 : index
    %48 = vector.load %arg4[%c2, %c0_36, %c0_37] : memref<3x128x128xbf16, #tpu.memory_space<vmem>>, vector<1x128x128xbf16>
    %49 = vector.shape_cast %48 : vector<1x128x128xbf16> to vector<128x128xbf16>
    %c2_38 = arith.constant 2 : index
    %c0_39 = arith.constant 0 : index
    %c0_40 = arith.constant 0 : index
    %50 = vector.load %arg5[%c2_38, %c0_39, %c0_40] : memref<3x1x128xf32, #tpu.memory_space<vmem>>, vector<1x1x128xf32>
    %51 = vector.shape_cast %50 : vector<1x1x128xf32> to vector<1x128xf32>
    %c2_41 = arith.constant 2 : index
    %c0_42 = arith.constant 0 : index
    %c0_43 = arith.constant 0 : index
    %52 = vector.load %arg6[%c2_41, %c0_42, %c0_43] : memref<3x128x128xbf16, #tpu.memory_space<vmem>>, vector<1x128x128xbf16>
    %53 = vector.shape_cast %52 : vector<1x128x128xbf16> to vector<128x128xbf16>
    %c2_44 = arith.constant 2 : index
    %c0_45 = arith.constant 0 : index
    %c0_46 = arith.constant 0 : index
    %54 = vector.load %arg7[%c2_44, %c0_45, %c0_46] : memref<3x1x128xf32, #tpu.memory_space<vmem>>, vector<1x1x128xf32>
    %55 = vector.shape_cast %54 : vector<1x1x128xf32> to vector<1x128xf32>
    %56 = arith.truncf %47 : vector<32x128xf32> to vector<32x128xbf16>
    %cst_47 = arith.constant 0.000000e+00 : bf16
    %57 = vector.broadcast %cst_47 : bf16 to vector<32x128xbf16>
    %58 = arith.maximumf %56, %57 : vector<32x128xbf16>
    %cst_48 = arith.constant dense<0.000000e+00> : vector<32x128xf32>
    %59 = tpu.matmul %58, %49, %cst_48 {dimension_numbers = #tpu.dot_dimension_numbers<[1], [0], [0], [1], [0, 0, 1, 1], [], []>} : vector<32x128xbf16>, vector<128x128xbf16>, vector<32x128xf32> -> vector<32x128xf32>
    %60 = vector.broadcast %51 : vector<1x128xf32> to vector<32x128xf32>
    %61 = arith.addf %59, %60 : vector<32x128xf32>
    %62 = arith.truncf %61 : vector<32x128xf32> to vector<32x128xbf16>
    %cst_49 = arith.constant 0.000000e+00 : bf16
    %63 = vector.broadcast %cst_49 : bf16 to vector<32x128xbf16>
    %64 = arith.maximumf %62, %63 : vector<32x128xbf16>
    %cst_50 = arith.constant dense<0.000000e+00> : vector<32x128xf32>
    %65 = tpu.matmul %64, %53, %cst_50 {dimension_numbers = #tpu.dot_dimension_numbers<[1], [0], [0], [1], [0, 0, 1, 1], [], []>} : vector<32x128xbf16>, vector<128x128xbf16>, vector<32x128xf32> -> vector<32x128xf32>
    %66 = vector.broadcast %55 : vector<1x128xf32> to vector<32x128xf32>
    %67 = arith.addf %65, %66 : vector<32x128xf32>
    %68 = arith.addf %47, %67 : vector<32x128xf32>
    %69 = arith.truncf %68 : vector<32x128xf32> to vector<32x128xbf16>
    %c0_51 = arith.constant 0 : index
    %c0_52 = arith.constant 0 : index
    %70 = vector.load %arg8[%c0_51, %c0_52] : memref<128x128xbf16, #tpu.memory_space<vmem>>, vector<128x128xbf16>
    %cst_53 = arith.constant dense<0.000000e+00> : vector<32x128xf32>
    %71 = tpu.matmul %69, %70, %cst_53 {dimension_numbers = #tpu.dot_dimension_numbers<[1], [0], [0], [1], [0, 0, 1, 1], [], []>} : vector<32x128xbf16>, vector<128x128xbf16>, vector<32x128xf32> -> vector<32x128xf32>
    %c0_54 = arith.constant 0 : index
    %c0_55 = arith.constant 0 : index
    %72 = vector.load %arg9[%c0_54, %c0_55] : memref<1x128xf32, #tpu.memory_space<vmem>>, vector<1x128xf32>
    %73 = vector.broadcast %72 : vector<1x128xf32> to vector<32x128xf32>
    %74 = arith.addf %71, %73 : vector<32x128xf32>
    %c0_56 = arith.constant 0 : index
    %c0_57 = arith.constant 0 : index
    %75 = vector.load %arg10[%c0_56, %c0_57] : memref<32x128xf32, #tpu.memory_space<vmem>>, vector<32x128xf32>
    tpu.vector_store %arg10[%c0_56, %c0_57], %74 {strides = array<i32>} : memref<32x128xf32, #tpu.memory_space<vmem>>, vector<32x128xf32>,
    return
  }
  func.func @transform_0(%arg0: i32) -> (i32, i32) {
    %c0_i32 = arith.constant 0 : i32
    %c0_i32_0 = arith.constant 0 : i32
    return %arg0, %c0_i32 : i32, i32
  }
  func.func @transform_1(%arg0: i32) -> (i32, i32) {
    %c0_i32 = arith.constant 0 : i32
    %c0_i32_0 = arith.constant 0 : i32
    %c0_i32_1 = arith.constant 0 : i32
    return %c0_i32, %c0_i32_0 : i32, i32
  }
  func.func @transform_2(%arg0: i32) -> (i32, i32) {
    %c0_i32 = arith.constant 0 : i32
    %c0_i32_0 = arith.constant 0 : i32
    %c0_i32_1 = arith.constant 0 : i32
    return %c0_i32, %c0_i32_0 : i32, i32
  }
  func.func @transform_3(%arg0: i32) -> (i32, i32, i32) {
    %c0_i32 = arith.constant 0 : i32
    %c0_i32_0 = arith.constant 0 : i32
    %c0_i32_1 = arith.constant 0 : i32
    %c0_i32_2 = arith.constant 0 : i32
    return %c0_i32, %c0_i32_0, %c0_i32_1 : i32, i32, i32
  }
  func.func @transform_4(%arg0: i32) -> (i32, i32, i32) {
    %c0_i32 = arith.constant 0 : i32
    %c0_i32_0 = arith.constant 0 : i32
    %c0_i32_1 = arith.constant 0 : i32
    %c0_i32_2 = arith.constant 0 : i32
    return %c0_i32, %c0_i32_0, %c0_i32_1 : i32, i32, i32
  }
  func.func @transform_5(%arg0: i32) -> (i32, i32, i32) {
    %c0_i32 = arith.constant 0 : i32
    %c0_i32_0 = arith.constant 0 : i32
    %c0_i32_1 = arith.constant 0 : i32
    %c0_i32_2 = arith.constant 0 : i32
    return %c0_i32, %c0_i32_0, %c0_i32_1 : i32, i32, i32
  }
  func.func @transform_6(%arg0: i32) -> (i32, i32, i32) {
    %c0_i32 = arith.constant 0 : i32
    %c0_i32_0 = arith.constant 0 : i32
    %c0_i32_1 = arith.constant 0 : i32
    %c0_i32_2 = arith.constant 0 : i32
    return %c0_i32, %c0_i32_0, %c0_i32_1 : i32, i32, i32
  }
  func.func @transform_7(%arg0: i32) -> (i32, i32) {
    %c0_i32 = arith.constant 0 : i32
    %c0_i32_0 = arith.constant 0 : i32
    %c0_i32_1 = arith.constant 0 : i32
    return %c0_i32, %c0_i32_0 : i32, i32
  }
  func.func @transform_8(%arg0: i32) -> (i32, i32) {
    %c0_i32 = arith.constant 0 : i32
    %c0_i32_0 = arith.constant 0 : i32
    %c0_i32_1 = arith.constant 0 : i32
    return %c0_i32, %c0_i32_0 : i32, i32
  }
  func.func @transform_9(%arg0: i32) -> (i32, i32) {
    %c0_i32 = arith.constant 0 : i32
    %c0_i32_0 = arith.constant 0 : i32
    return %arg0, %c0_i32 : i32, i32
  }
}

</mosaic_0001>

<bundles_post_ra>
// kernel: regression_net_forward.1
= control target key start
LH: loop header
LB: loop body
LE: loop exit
PB: predicated region body
PF: predicated region fallthrough
CT: control target
= control target key end

     0   :  { %14 = vsyncpa [#allocation3], 0  ;;  %s2283_s0 = inlined_call_operand.vmem [shape: bf16[64,12], index: 0, kind: input, shape index: {}]   ;;  %s2284_s1 = inlined_call_operand.vmem [shape: bf16[12,128], index: 1, kind: input, shape index: {}]   ;;  %s2285_s2 = inlined_call_operand.hbm [shape: f32[1,128], index: 2, kind: input, shape index: {}]   ;;  %s2286_s3 = inlined_call_operand.hbm [shape: bf16[3,128,128], index: 3, kind: input, shape index: {}]   ;;  %s2287_s4 = inlined_call_operand.vmem [shape: f32[3,1,128], index: 4, kind: input, shape index: {}]   ;;  %s2288_s5 = inlined_call_operand.hbm [shape: bf16[3,128,128], index: 5, kind: input, shape index: {}]   ;;  %s2289_s6 = inlined_call_operand.vmem [shape: f32[3,1,128], index: 6, kind: input, shape index: {}]   ;;  %s2290_s7 = inlined_call_operand.vmem [shape: bf16[128,128], index: 7, kind: input, shape index: {}]   ;;  %s2291_s8 = inlined_call_operand.hbm [shape: f32[1,128], index: 8, kind: input, shape index: {}]   ;;  %s2292_s9 = inlined_call_operand.vmem [shape: f32[64,128], index: 9, kind: output, shape index: {}]  }
   0x1   :  { %15 = vsyncpa [#allocation5], 0 }
   0x2   :  { %16 = vsyncpa [#allocation8], 0  ;;  %s2071_s30 = smov 0  }
   0x3 LB: > { %s2014_s10 = smov [#allocation4]   ;;  %s1467_s12 = sadd.s32 4294967295, %s2012_s30   ;;  %s2012_s30 = sphi %s2071_s30, %s22_s30  }
   0x4   : > { %s273_s11 = sshll.u32 %s2014_s10, 4  ;;  %p1469_p0 = scmp.ge.s32.totalorder %s2012_s30, 1  ;;  %s274_s11 = int_to_ptr.vmem [resolvable:$true] %s273_s11 }
   0x5   : > { %p247_p1 = scmp.lt.s32.totalorder %s2012_s30, 3  ;;  %p2081_p2 = scmp.eq.s32.totalorder %s1467_s12, 0 }
   0x6   : > { %s2015_s15 = smov [#allocation2]   ;;  %s2016_s18 = smov [#allocation6]  }
   0x7   : > { %p2085_p3 = pnand %p1469_p0, %p247_p1  ;;  %s263_s16 = sshll.u32 %s2015_s15, 4  ;;  %s2091_s16 = int_to_ptr.vmem [resolvable:$true] %s263_s16 }
   0x8   : > { %s289_s19 = sshll.u32 %s2016_s18, 4  ;;  %s2017_s20 = smov [#allocation7]   ;;  %s2099_s19 = int_to_ptr.vmem [resolvable:$true] %s289_s19 }
   0x9   : > { %p1795_p4 = pneg %p2085_p3  ;;  %s2101_s21 = sshll.u32 %s2017_s20, 4  ;;  %s310_s21 = int_to_ptr.vmem [resolvable:$true] %s2101_s21 }
   0xa   : > { %s1901_s22 = scalar_lea.vmem %s274_s11, 3072  ;;  %p1909_p10 = scmp.lt.s32.totalorder %s274_s11, %s274_s11 }
   0xb   : > { %p2095_p5 = pnand %p2081_p2, %p1795_p4  ;;  %p1902_p7 = scmp.ne.s32.totalorder %s274_s11, %s1901_s22 }
   0xc   : > { %p1910_p11 = scmp.lt.s32.totalorder %s1901_s22, %s1901_s22 }
   0xd   : > { %p1892_p6 = pneg %p2095_p5 }
   0xe   : > { %p1911_p12 = por %p1910_p11, %p1909_p10 }
   0xf   : > { %p1904_p8 = pnand %p1902_p7, %p1892_p6 }
  0x11   : > { %p1905_p9 = pneg %p1904_p8 }
  0x13   : > { %p1912_p13 = pnand %p1911_p12, %p1905_p9 }
  0x15   : > { %1915 = shalt.err (!%p1912_p13)
}
  0x16   : > { %s2018_s23 = smov 64   ;;  %s2019_s24 = smov 4  }
  0x17   : > { %1801 = dma.hbm_to_vmem [thread:$0]  (!%p2095_p5), %s2286_s3, 3072, %s274_s11, [#allocation5], %s2018_s23, %s2018_s23, %s2019_s24  }
  0x18   : > { %s1927_s27 = scalar_lea.vmem %s2091_s16, 16  ;;  %s1934_s28 = scalar_lea.vmem %s2091_s16, 32 }
  0x19   : > { %p1928_p0 = scmp.ne.s32.totalorder %s2091_s16, %s1927_s27  ;;  %p1935_p7 = scmp.lt.s32.totalorder %s2091_s16, %s2091_s16 }
  0x1a   : > { %p1936_p8 = scmp.lt.s32.totalorder %s1934_s28, %s1927_s27 }
  0x1b   : > { %p1930_p1 = pnand %p1928_p0, %p1892_p6 }
  0x1c   : > { %p1937_p9 = por %p1936_p8, %p1935_p7 }
  0x1d   : > { %p1931_p4 = pneg %p1930_p1 }
  0x1f   : > { %p1938_p10 = pnand %p1937_p9, %p1931_p4 }
  0x21   : > { %1941 = shalt.err (!%p1938_p10)
}
  0x22   : > { %1798 = dma.hbm_to_vmem [thread:$0]  (!%p2095_p5), %s2285_s2, 16, %s2091_s16, [#allocation3]  }
  0x23   : > { %s1953_s11 = scalar_lea.vmem %s2099_s19, 3072  ;;  %p1961_p0 = scmp.lt.s32.totalorder %s2099_s19, %s2099_s19 }
  0x24   : > { %p1954_p11 = scmp.ne.s32.totalorder %s2099_s19, %s1953_s11  ;;  %p1962_p1 = scmp.lt.s32.totalorder %s1953_s11, %s1953_s11 }
  0x26   : > { %p1956_p12 = pnand %p1954_p11, %p1892_p6  ;;  %p1963_p4 = por %p1962_p1, %p1961_p0 }
  0x28   : > { %p1957_p13 = pneg %p1956_p12 }
  0x2a   : > { %p1964_p7 = pnand %p1963_p4, %p1957_p13 }
  0x2c   : > { %1967 = shalt.err (!%p1964_p7)
}
  0x2d   : > { %1804 = dma.hbm_to_vmem [thread:$0]  (!%p2095_p5), %s2288_s5, 3072, %s2099_s19, [#allocation5], %s2018_s23, %s2018_s23, %s2019_s24  }
  0x2e   : > { %s1979_s16 = scalar_lea.vmem %s310_s21, 16  ;;  %s1986_s20 = scalar_lea.vmem %s310_s21, 32 }
  0x2f   : > { %p1980_p8 = scmp.ne.s32.totalorder %s310_s21, %s1979_s16  ;;  %p1987_p11 = scmp.lt.s32.totalorder %s310_s21, %s310_s21 }
  0x30   : > { %p1988_p12 = scmp.lt.s32.totalorder %s1986_s20, %s1979_s16 }
  0x31   : > { %p1982_p9 = pnand %p1980_p8, %p1892_p6 }
  0x32   : > { %p1989_p13 = por %p1988_p12, %p1987_p11 }
  0x33   : > { %p1983_p10 = pneg %p1982_p9 }
  0x35   : > { %p1990_p0 = pnand %p1989_p13, %p1983_p10 }
  0x37   : > { %1993 = shalt.err (!%p1990_p0)
}
  0x38   : > { %1807 = dma.hbm_to_vmem [thread:$0]  (!%p2095_p5), %s2291_s8, 16, %s310_s21, [#allocation8]  }
  0x39   : > { %331 = sbr.rel (%p2085_p3) target bundleno = 1723 (0x6bb), region = 56 }
  0x3e   : > { %1999 = dma.done.wait (%p2081_p2), [#allocation3], 16  }
  0x3f   : > { %2001 = vsyncadd (%p2081_p2), [#allocation3], 4294967280 }
  0x40   : > { %2003 = dma.done.wait (%p2081_p2), [#allocation5], 6144  }
  0x41   : > { %2005 = vsyncadd (%p2081_p2), [#allocation5], 4294961152 }
  0x42   : > { %2007 = dma.done.wait (%p2081_p2), [#allocation8], 16  }
  0x43   : > { %2009 = vsyncadd (%p2081_p2), [#allocation8], 4294967280  ;;  %s1480_s14 = sshll.u32 %s1467_s12, 2  ;;  %vm427_vm0 = vcmask 1045504   ;;  %vm420_vm1 = vcmask 97280   ;;  %v1834_v4 = vld [vmem:[#allocation4 + $0x38] sm:$0xff]  }
  0x44   : > { %p380_p3 = scmp.lt.s32.totalorder %s1480_s14, 7  ;;  %v1831_v0 = vld [vmem:[%s2284_s1] sm:$0x3f]   ;;  %v1835_v5 = vld [vmem:[#allocation4 + $0x30] sm:$0xff]   ;;  %1638 = vmatprep.subr.bf16.mxu1 %v1834_v4  ;;  %v1836_v6 = vld [vmem:[#allocation4 + $0x28] sm:$0xff]   ;;  %v2020_v28 = vmov 0  }
  0x45   : > { %1778 = vmatprep.subr.msk.bf16.mxu0 %vm427_vm0, %v1831_v0  ;;  %v429_v2 = vsel %vm427_vm0, %v1831_v0, 0  ;;  %1639 = vmatpush3.bf16.msra.mxu1 %v1834_v4  ;;  %v1837_v7 = vld [vmem:[#allocation4 + $0x20] sm:$0xff]   ;;  %v1838_v8 = vld [vmem:[#allocation4 + $0x18] sm:$0xff]   ;;  %v1839_v9 = vld [vmem:[#allocation4 + $0x10] sm:$0xff]  }
  0x46   : > { %s2297_s14 = smov (!%p380_p3, %s1480_s14), 7  ;;  %1633 = vmatpush3.bf16.msra.mxu0 %v429_v2  ;;  %1640 = vmatprep.subr.bf16.mxu1 %v1835_v5  ;;  %v1840_v10 = vld [vmem:[#allocation4 + $0x8] sm:$0xff]   ;;  %v1841_v11 = vld [vmem:[#allocation4] sm:$0xff]   ;;  %v1842_v12 = vld [vmem:[#allocation6 + $0x38] sm:$0xff]  }
  0x47   : > { %s1481_s17 = sshll.u32 %s2297_s14, 2  ;;  %v1843_v13 = vld [vmem:[#allocation6 + $0x30] sm:$0xff]   ;;  %1658 = vmatprep.subr.bf16.mxu0 %v1842_v12  ;;  %v1844_v14 = vld [vmem:[#allocation6 + $0x28] sm:$0xff]   ;;  %v1845_v15 = vld [vmem:[#allocation6 + $0x20] sm:$0xff]   ;;  %s1483_s16 = sshll.u32 %s2297_s14, 3 }
  0x48   : > { %s383_s23 = scalar_lea.vmem %s2283_s0, %s1481_s17  ;;  %v1846_v16 = vld [vmem:[#allocation6 + $0x18] sm:$0xff]   ;;  %v1847_v31 = vld [vmem:[#allocation6 + $0x10] sm:$0xff]   ;;  %v1848_v32 = vld [vmem:[#allocation6 + $0x8] sm:$0xff]   ;;  %s389_s25 = scalar_lea.vmem %s2292_s9, %s1483_s16 }
  0x49   : > { %v1832_v1 = vld [vmem:[%s383_s23] sm:$0xff]   ;;  %v1833_v3 = vld [vmem:[%s383_s23 + $0x8] sm:$0xff]   ;;  %1641 = vmatpush3.bf16.msra.mxu1 %v1835_v5  ;;  %v1851_v35 = vld [vmem:[#allocation4 + $0x70] sm:$0xff]  }
  0x4a   : > { %1634 = vmatprep.mubr.msk.bf16.mxu0 %vm420_vm1, %v1832_v1  ;;  %1642 = vmatprep.subr.bf16.mxu1 %v1836_v6  ;;  %v1484_v19 = vld [vmem:[#allocation2] ss:$0 sm:$0xff]  ;;  %v1849_v33 = vld [vmem:[#allocation6] sm:$0xff]   ;;  %v1852_v36 = vld [vmem:[#allocation4 + $0x68] sm:$0xff]  }
  0x4b   : > { %1635 = vmatmul.mubr.msk.bf16.vlgmr.msra.gmra.mxu0 %vm420_vm1, %v1833_v3  ;;  %v1850_v34 = vld [vmem:[#allocation4 + $0x78] sm:$0xff]   ;;  %v1853_v37 = vld [vmem:[#allocation4 + $0x60] sm:$0xff]   ;;  %v1855_v52 = vld [vmem:[#allocation4 + $0x50] sm:$0xff]  }
  0x4c   : > { %1659 = vmatpush3.bf16.msra.mxu0 %v1842_v12  ;;  %v1490_v40 = vld [vmem:[%s2287_s4] ss:$0 sm:$0xff]  ;;  %v1856_v53 = vld [vmem:[#allocation4 + $0x48] sm:$0xff]   ;;  %v1857_v54 = vld [vmem:[#allocation4 + $0x40] sm:$0xff]  }
  0x4d   : > { %1643 = vmatpush3.bf16.msra.mxu1 %v1836_v6  ;;  %1660 = vmatprep.subr.bf16.mxu0 %v1843_v13  ;;  %v1854_v51 = vld [vmem:[#allocation4 + $0x58] sm:$0xff]   ;;  %v1859_v56 = vld [vmem:[#allocation6 + $0x70] sm:$0xff]   ;;  %v1860_v57 = vld [vmem:[#allocation6 + $0x68] sm:$0xff]  }
  0x4e   : > { %1644 = vmatprep.subr.bf16.mxu1 %v1837_v7  ;;  %v1858_v55 = vld [vmem:[#allocation6 + $0x78] sm:$0xff]   ;;  %v1861_v58 = vld [vmem:[#allocation6 + $0x60] sm:$0xff]  }
  0x4f   : > { %v1862_v59 = vld [vmem:[#allocation6 + $0x58] sm:$0xff]  }
  0x50   : > { %1661 = vmatpush3.bf16.msra.mxu0 %v1843_v13  ;;  %v1499_v61 = vld [vmem:[%s2289_s6] ss:$0 sm:$0xff]  ;;  %v1863_v13 = vld [vmem:[#allocation6 + $0x50] sm:$0xff]  }
  0x51   : > { %1645 = vmatpush3.bf16.msra.mxu1 %v1837_v7  ;;  %1662 = vmatprep.subr.bf16.mxu0 %v1844_v14 }
  0x52   : > { %1646 = vmatprep.subr.bf16.mxu1 %v1838_v8 }
  0x54   : > { %1663 = vmatpush3.bf16.msra.mxu0 %v1844_v14  ;;  %v1864_v14 = vld [vmem:[#allocation6 + $0x48] sm:$0xff]  }
  0x55   : > { %1647 = vmatpush3.bf16.msra.mxu1 %v1838_v8  ;;  %1664 = vmatprep.subr.bf16.mxu0 %v1845_v15 }
  0x56   : > { %1648 = vmatprep.subr.bf16.mxu1 %v1839_v9 }
  0x58   : > { %1665 = vmatpush3.bf16.msra.mxu0 %v1845_v15  ;;  %v1865_v15 = vld [vmem:[#allocation6 + $0x40] sm:$0xff]  }
  0x59   : > { %1649 = vmatpush3.bf16.msra.mxu1 %v1839_v9  ;;  %1666 = vmatprep.subr.bf16.mxu0 %v1846_v16 }
  0x5a   : > { %1650 = vmatprep.subr.bf16.mxu1 %v1840_v10 }
  0x5c   : > { %1667 = vmatpush3.bf16.msra.mxu0 %v1846_v16  ;;  %v1866_v16 = vld [vmem:[#allocation4 + $0xb8] sm:$0xff]  }
  0x5d   : > { %1651 = vmatpush3.bf16.msra.mxu1 %v1840_v10  ;;  %1668 = vmatprep.subr.bf16.mxu0 %v1847_v31 }
  0x5e   : > { %1652 = vmatprep.subr.bf16.mxu1 %v1841_v11 }
  0x60   : > { %1669 = vmatpush3.bf16.msra.mxu0 %v1847_v31 }
  0x61   : > { %1653 = vmatpush3.bf16.msra.mxu1 %v1841_v11  ;;  %1670 = vmatprep.subr.bf16.mxu0 %v1848_v32 }
  0x62   : > { %1678 = vmatprep.subr.bf16.mxu1 %v1850_v34 }
  0x64   : > { %1671 = vmatpush3.bf16.msra.mxu0 %v1848_v32 }
  0x65   : > { %1672 = vmatprep.subr.bf16.mxu0 %v1849_v33 }
  0x68   : > { %1673 = vmatpush3.bf16.msra.mxu0 %v1849_v33 }
  0x69   : > { %1698 = vmatprep.subr.bf16.mxu0 %v1858_v55 }
 0x10b   : > { %v1636_v17 = vpop.f32.mrf.mxu0 }
 0x10c   : > { %v2176_v22 = vadd.f32 %v1636_v17, %v1484_v19  ;;  %v1867_v17 = vld [vmem:[#allocation4 + $0xb0] sm:$0xff]  }
 0x10d   : > { %v465_v18 = vpop.f32.mrf.mxu0 }
 0x10e   : > { %v2178_v24 = vadd.f32 %v1484_v19, %v465_v18  ;;  %v1868_v18 = vld [vmem:[#allocation4 + $0xa8] sm:$0xff]  }
 0x10f   : > { %v1637_v20 = vpop.f32.mrf.mxu0 }
 0x110   : > { %v2174_v21 = vadd.f32 %v1637_v20, %v1484_v19 }
 0x111   : > { %v468_v23 = vpop.f32.mrf.mxu0 }
 0x112   : > { %v2180_v25 = vadd.f32 %v1484_v19, %v468_v23  ;;  %v515_v26 = vpack.c.bf16 %v2174_v21, %v2176_v22  ;;  %v1869_v19 = vld [vmem:[#allocation4 + $0xa0] sm:$0xff]  }
 0x114   : > { %v514_v27 = vpack.c.bf16 %v2180_v25, %v2178_v24  ;;  %v517_v30 = vmax.bf16 %v2020_v28, %v515_v26 }
 0x116   : > { %v516_v29 = vmax.bf16 %v2020_v28, %v514_v27 }
 0x118   : > { %1654 = vmatprep.mubr.bf16.mxu1 %v516_v29 }
 0x119   : > { %1655 = vmatmul.mubr.bf16.vlgmr.msra.gmra.mxu1 %v517_v30 }
 0x11a   : > { %1679 = vmatpush3.bf16.msra.mxu1 %v1850_v34  ;;  %v1870_v34 = vld [vmem:[#allocation4 + $0x98] sm:$0xff]  }
 0x11b   : > { %1680 = vmatprep.subr.bf16.mxu1 %v1851_v35 }
 0x11e   : > { %1681 = vmatpush3.bf16.msra.mxu1 %v1851_v35  ;;  %v1871_v35 = vld [vmem:[#allocation4 + $0x90] sm:$0xff]  }
 0x11f   : > { %1682 = vmatprep.subr.bf16.mxu1 %v1852_v36 }
 0x122   : > { %1683 = vmatpush3.bf16.msra.mxu1 %v1852_v36  ;;  %v1872_v36 = vld [vmem:[#allocation4 + $0x88] sm:$0xff]  }
 0x123   : > { %1684 = vmatprep.subr.bf16.mxu1 %v1853_v37 }
 0x126   : > { %1685 = vmatpush3.bf16.msra.mxu1 %v1853_v37  ;;  %v1873_v37 = vld [vmem:[#allocation4 + $0x80] sm:$0xff]  }
 0x127   : > { %1686 = vmatprep.subr.bf16.mxu1 %v1854_v51 }
 0x12a   : > { %1687 = vmatpush3.bf16.msra.mxu1 %v1854_v51 }
 0x12b   : > { %1688 = vmatprep.subr.bf16.mxu1 %v1855_v52 }
 0x12e   : > { %1689 = vmatpush3.bf16.msra.mxu1 %v1855_v52 }
 0x12f   : > { %1690 = vmatprep.subr.bf16.mxu1 %v1856_v53 }
 0x132   : > { %1691 = vmatpush3.bf16.msra.mxu1 %v1856_v53 }
 0x133   : > { %1692 = vmatprep.subr.bf16.mxu1 %v1857_v54 }
 0x136   : > { %1693 = vmatpush3.bf16.msra.mxu1 %v1857_v54 }
 0x137   : > { %1718 = vmatprep.subr.bf16.mxu1 %v1866_v16 }
 0x1d9   : > { %v1656_v38 = vpop.f32.mrf.mxu1 }
 0x1da   : > { %v615_v43 = vadd.f32 %v1656_v38, %v1490_v40  ;;  %v1874_v38 = vld [vmem:[#allocation6 + $0xb8] sm:$0xff]  }
 0x1db   : > { %v606_v39 = vpop.f32.mrf.mxu1 }
 0x1dc   : > { %v607_v45 = vadd.f32 %v1490_v40, %v606_v39  ;;  %v1875_v39 = vld [vmem:[#allocation6 + $0xb0] sm:$0xff]  }
 0x1dd   : > { %v1657_v41 = vpop.f32.mrf.mxu1 }
 0x1de   : > { %v618_v42 = vadd.f32 %v1657_v41, %v1490_v40  ;;  %v1877_v41 = vld [vmem:[#allocation6 + $0xa0] sm:$0xff]  }
 0x1df   : > { %v609_v44 = vpop.f32.mrf.mxu1 }
 0x1e0   : > { %v610_v46 = vadd.f32 %v1490_v40, %v609_v44  ;;  %v622_v47 = vpack.c.bf16 %v618_v42, %v615_v43  ;;  %v1876_v40 = vld [vmem:[#allocation6 + $0xa8] sm:$0xff]   ;;  %v1878_v42 = vld [vmem:[#allocation6 + $0x98] sm:$0xff]  }
 0x1e1   : > { %v1519_v44 = vld [vmem:[%s2289_s6 + $0x1] ss:$0 sm:$0xff] }
 0x1e2   : > { %v621_v48 = vpack.c.bf16 %v610_v46, %v607_v45  ;;  %v624_v50 = vmax.bf16 %v2020_v28, %v622_v47 }
 0x1e4   : > { %v623_v49 = vmax.bf16 %v2020_v28, %v621_v48 }
 0x1e6   : > { %1674 = vmatprep.mubr.bf16.mxu0 %v623_v49 }
 0x1e7   : > { %1675 = vmatmul.mubr.bf16.vlgmr.msra.gmra.mxu0 %v624_v50 }
 0x1e8   : > { %1699 = vmatpush3.bf16.msra.mxu0 %v1858_v55 }
 0x1e9   : > { %1700 = vmatprep.subr.bf16.mxu0 %v1859_v56 }
 0x1ec   : > { %1701 = vmatpush3.bf16.msra.mxu0 %v1859_v56 }
 0x1ed   : > { %1702 = vmatprep.subr.bf16.mxu0 %v1860_v57 }
 0x1f0   : > { %1703 = vmatpush3.bf16.msra.mxu0 %v1860_v57 }
 0x1f1   : > { %1704 = vmatprep.subr.bf16.mxu0 %v1861_v58 }
 0x1f4   : > { %1705 = vmatpush3.bf16.msra.mxu0 %v1861_v58 }
 0x1f5   : > { %1706 = vmatprep.subr.bf16.mxu0 %v1862_v59 }
 0x1f8   : > { %1707 = vmatpush3.bf16.msra.mxu0 %v1862_v59 }
 0x1f9   : > { %1708 = vmatprep.subr.bf16.mxu0 %v1863_v13 }
 0x1fc   : > { %1709 = vmatpush3.bf16.msra.mxu0 %v1863_v13 }
 0x1fd   : > { %1710 = vmatprep.subr.bf16.mxu0 %v1864_v14 }
 0x200   : > { %1711 = vmatpush3.bf16.msra.mxu0 %v1864_v14 }
 0x201   : > { %1712 = vmatprep.subr.bf16.mxu0 %v1865_v15 }
 0x204   : > { %1713 = vmatpush3.bf16.msra.mxu0 %v1865_v15 }
 0x205   : > { %1738 = vmatprep.subr.bf16.mxu0 %v1874_v38 }
 0x2a7   : > { %v1676_v60 = vpop.f32.mrf.mxu0 }
 0x2a8   : > { %v722_v63 = vadd.f32 %v1676_v60, %v1499_v61  ;;  %v1879_v60 = vld [vmem:[#allocation6 + $0x90] sm:$0xff]  }
 0x2a9   : > { %v713_v62 = vpop.f32.mrf.mxu0 }
 0x2aa   : > { %v714_v1 = vadd.f32 %v1499_v61, %v713_v62  ;;  %v2200_v6 = vadd.f32 %v722_v63, %v2176_v22  ;;  %v1510_v22 = vld [vmem:[%s2287_s4 + $0x1] ss:$0 sm:$0xff]  ;;  %v1881_v62 = vld [vmem:[#allocation6 + $0x80] sm:$0xff]   ;;  %v1882_v63 = vld [vmem:[%s2290_s7 + $0x38] sm:$0xff]  }
 0x2ab   : > { %v1677_v0 = vpop.f32.mrf.mxu0 }
 0x2ac   : > { %v725_v2 = vadd.f32 %v1677_v0, %v1499_v61  ;;  %v2203_v7 = vadd.f32 %v714_v1, %v2178_v24  ;;  %v1883_v0 = vld [vmem:[%s2290_s7 + $0x30] sm:$0xff]   ;;  %v1884_v1 = vld [vmem:[%s2290_s7 + $0x28] sm:$0xff]  }
 0x2ad   : > { %v716_v3 = vpop.f32.mrf.mxu0 }
 0x2ae   : > { %v2197_v4 = vadd.f32 %v725_v2, %v2174_v21  ;;  %v717_v5 = vadd.f32 %v1499_v61, %v716_v3  ;;  %v1880_v61 = vld [vmem:[#allocation6 + $0x88] sm:$0xff]   ;;  %v1885_v2 = vld [vmem:[%s2290_s7 + $0x20] sm:$0xff]   ;;  %v1886_v3 = vld [vmem:[%s2290_s7 + $0x18] sm:$0xff]  }
 0x2b0   : > { %v2206_v8 = vadd.f32 %v717_v5, %v2180_v25  ;;  %v771_v9 = vpack.c.bf16 %v2197_v4, %v2200_v6 }
 0x2b2   : > { %v770_v10 = vpack.c.bf16 %v2206_v8, %v2203_v7  ;;  %v773_v12 = vmax.bf16 %v2020_v28, %v771_v9 }
 0x2b4   : > { %v772_v11 = vmax.bf16 %v2020_v28, %v770_v10 }
 0x2b6   : > { %1694 = vmatprep.mubr.bf16.mxu1 %v772_v11 }
 0x2b7   : > { %1695 = vmatmul.mubr.bf16.vlgmr.msra.gmra.mxu1 %v773_v12 }
 0x2b8   : > { %1719 = vmatpush3.bf16.msra.mxu1 %v1866_v16 }
 0x2b9   : > { %1720 = vmatprep.subr.bf16.mxu1 %v1867_v17 }
 0x2bc   : > { %1721 = vmatpush3.bf16.msra.mxu1 %v1867_v17  ;;  %v1887_v17 = vld [vmem:[%s2290_s7 + $0x10] sm:$0xff]  }
 0x2bd   : > { %1722 = vmatprep.subr.bf16.mxu1 %v1868_v18 }
 0x2c0   : > { %1723 = vmatpush3.bf16.msra.mxu1 %v1868_v18  ;;  %v1888_v18 = vld [vmem:[%s2290_s7 + $0x8] sm:$0xff]  }
 0x2c1   : > { %1724 = vmatprep.subr.bf16.mxu1 %v1869_v19 }
 0x2c4   : > { %1725 = vmatpush3.bf16.msra.mxu1 %v1869_v19  ;;  %v1889_v19 = vld [vmem:[%s2290_s7] sm:$0xff]  }
 0x2c5   : > { %1726 = vmatprep.subr.bf16.mxu1 %v1870_v34 }
 0x2c8   : > { %1727 = vmatpush3.bf16.msra.mxu1 %v1870_v34 }
 0x2c9   : > { %1728 = vmatprep.subr.bf16.mxu1 %v1871_v35 }
 0x2cc   : > { %1729 = vmatpush3.bf16.msra.mxu1 %v1871_v35 }
 0x2cd   : > { %1730 = vmatprep.subr.bf16.mxu1 %v1872_v36 }
 0x2d0   : > { %1731 = vmatpush3.bf16.msra.mxu1 %v1872_v36  ;;  %v1548_v36 = vld [vmem:[#allocation7] ss:$0 sm:$0xff] }
 0x2d1   : > { %1732 = vmatprep.subr.bf16.mxu1 %v1873_v37 }
 0x2d4   : > { %1733 = vmatpush3.bf16.msra.mxu1 %v1873_v37 }
 0x2d5   : > { %1758 = vmatprep.subr.bf16.mxu1 %v1882_v63 }
 0x377   : > { %v1696_v20 = vpop.f32.mrf.mxu1 }
 0x378   : > { %v871_v25 = vadd.f32 %v1696_v20, %v1510_v22 }
 0x379   : > { %v862_v21 = vpop.f32.mrf.mxu1 }
 0x37a   : > { %v863_v27 = vadd.f32 %v1510_v22, %v862_v21  ;;  %v1539_v21 = vld [vmem:[%s2289_s6 + $0x2] ss:$0 sm:$0xff] }
 0x37b   : > { %v1697_v23 = vpop.f32.mrf.mxu1 }
 0x37c   : > { %v874_v24 = vadd.f32 %v1697_v23, %v1510_v22 }
 0x37d   : > { %v865_v26 = vpop.f32.mrf.mxu1 }
 0x37e   : > { %v866_v29 = vadd.f32 %v1510_v22, %v865_v26  ;;  %v878_v30 = vpack.c.bf16 %v874_v24, %v871_v25 }
 0x380   : > { %v877_v31 = vpack.c.bf16 %v866_v29, %v863_v27  ;;  %v880_v33 = vmax.bf16 %v2020_v28, %v878_v30 }
 0x382   : > { %v879_v32 = vmax.bf16 %v2020_v28, %v877_v31 }
 0x384   : > { %1714 = vmatprep.mubr.bf16.mxu0 %v879_v32 }
 0x385   : > { %1715 = vmatmul.mubr.bf16.vlgmr.msra.gmra.mxu0 %v880_v33 }
 0x386   : > { %1739 = vmatpush3.bf16.msra.mxu0 %v1874_v38 }
 0x387   : > { %1740 = vmatprep.subr.bf16.mxu0 %v1875_v39 }
 0x38a   : > { %1741 = vmatpush3.bf16.msra.mxu0 %v1875_v39 }
 0x38b   : > { %1742 = vmatprep.subr.bf16.mxu0 %v1876_v40 }
 0x38e   : > { %1743 = vmatpush3.bf16.msra.mxu0 %v1876_v40 }
 0x38f   : > { %1744 = vmatprep.subr.bf16.mxu0 %v1877_v41 }
 0x392   : > { %1745 = vmatpush3.bf16.msra.mxu0 %v1877_v41 }
 0x393   : > { %1746 = vmatprep.subr.bf16.mxu0 %v1878_v42 }
 0x396   : > { %1747 = vmatpush3.bf16.msra.mxu0 %v1878_v42 }
 0x397   : > { %1748 = vmatprep.subr.bf16.mxu0 %v1879_v60 }
 0x39a   : > { %1749 = vmatpush3.bf16.msra.mxu0 %v1879_v60 }
 0x39b   : > { %1750 = vmatprep.subr.bf16.mxu0 %v1880_v61 }
 0x39e   : > { %1751 = vmatpush3.bf16.msra.mxu0 %v1880_v61 }
 0x39f   : > { %1752 = vmatprep.subr.bf16.mxu0 %v1881_v62 }
 0x3a2   : > { %1753 = vmatpush3.bf16.msra.mxu0 %v1881_v62 }
 0x445   : > { %v1716_v43 = vpop.f32.mrf.mxu0 }
 0x446   : > { %v978_v46 = vadd.f32 %v1716_v43, %v1519_v44 }
 0x447   : > { %v969_v45 = vpop.f32.mrf.mxu0 }
 0x448   : > { %v970_v48 = vadd.f32 %v1519_v44, %v969_v45  ;;  %v2226_v53 = vadd.f32 %v978_v46, %v2200_v6  ;;  %v1530_v6 = vld [vmem:[%s2287_s4 + $0x2] ss:$0 sm:$0xff] }
 0x449   : > { %v1717_v47 = vpop.f32.mrf.mxu0 }
 0x44a   : > { %v981_v49 = vadd.f32 %v1717_v47, %v1519_v44  ;;  %v2229_v54 = vadd.f32 %v970_v48, %v2203_v7 }
 0x44b   : > { %v972_v50 = vpop.f32.mrf.mxu0 }
 0x44c   : > { %v2223_v51 = vadd.f32 %v981_v49, %v2197_v4  ;;  %v973_v52 = vadd.f32 %v1519_v44, %v972_v50 }
 0x44e   : > { %v2232_v55 = vadd.f32 %v973_v52, %v2206_v8  ;;  %v1027_v56 = vpack.c.bf16 %v2223_v51, %v2226_v53 }
 0x450   : > { %v1026_v57 = vpack.c.bf16 %v2232_v55, %v2229_v54  ;;  %v1029_v59 = vmax.bf16 %v2020_v28, %v1027_v56 }
 0x452   : > { %v1028_v58 = vmax.bf16 %v2020_v28, %v1026_v57 }
 0x454   : > { %1734 = vmatprep.mubr.bf16.mxu1 %v1028_v58 }
 0x455   : > { %1735 = vmatmul.mubr.bf16.vlgmr.msra.gmra.mxu1 %v1029_v59 }
 0x456   : > { %1759 = vmatpush3.bf16.msra.mxu1 %v1882_v63 }
 0x457   : > { %1760 = vmatprep.subr.bf16.mxu1 %v1883_v0 }
 0x45a   : > { %1761 = vmatpush3.bf16.msra.mxu1 %v1883_v0 }
 0x45b   : > { %1762 = vmatprep.subr.bf16.mxu1 %v1884_v1 }
 0x45e   : > { %1763 = vmatpush3.bf16.msra.mxu1 %v1884_v1 }
 0x45f   : > { %1764 = vmatprep.subr.bf16.mxu1 %v1885_v2 }
 0x462   : > { %1765 = vmatpush3.bf16.msra.mxu1 %v1885_v2 }
 0x463   : > { %1766 = vmatprep.subr.bf16.mxu1 %v1886_v3 }
 0x466   : > { %1767 = vmatpush3.bf16.msra.mxu1 %v1886_v3 }
 0x467   : > { %1768 = vmatprep.subr.bf16.mxu1 %v1887_v17 }
 0x46a   : > { %1769 = vmatpush3.bf16.msra.mxu1 %v1887_v17 }
 0x46b   : > { %1770 = vmatprep.subr.bf16.mxu1 %v1888_v18 }
 0x46e   : > { %1771 = vmatpush3.bf16.msra.mxu1 %v1888_v18 }
 0x46f   : > { %1772 = vmatprep.subr.bf16.mxu1 %v1889_v19 }
 0x472   : > { %1773 = vmatpush3.bf16.msra.mxu1 %v1889_v19 }
 0x515   : > { %v1736_v4 = vpop.f32.mrf.mxu1 }
 0x516   : > { %v1127_v9 = vadd.f32 %v1736_v4, %v1530_v6 }
 0x517   : > { %v1118_v5 = vpop.f32.mrf.mxu1 }
 0x518   : > { %v1119_v11 = vadd.f32 %v1530_v6, %v1118_v5 }
 0x519   : > { %v1737_v7 = vpop.f32.mrf.mxu1 }
 0x51a   : > { %v1130_v8 = vadd.f32 %v1737_v7, %v1530_v6 }
 0x51b   : > { %v1121_v10 = vpop.f32.mrf.mxu1 }
 0x51c   : > { %v1122_v12 = vadd.f32 %v1530_v6, %v1121_v10  ;;  %v1134_v13 = vpack.c.bf16 %v1130_v8, %v1127_v9 }
 0x51e   : > { %v1133_v14 = vpack.c.bf16 %v1122_v12, %v1119_v11  ;;  %v1136_v16 = vmax.bf16 %v2020_v28, %v1134_v13 }
 0x520   : > { %v1135_v15 = vmax.bf16 %v2020_v28, %v1133_v14 }
 0x522   : > { %1754 = vmatprep.mubr.bf16.mxu0 %v1135_v15 }
 0x523   : > { %1755 = vmatmul.mubr.bf16.vlgmr.msra.gmra.mxu0 %v1136_v16 }
 0x5e3   : > { %v1756_v28 = vpop.f32.mrf.mxu0 }
 0x5e4   : > { %v1234_v25 = vadd.f32 %v1756_v28, %v1539_v21 }
 0x5e5   : > { %v1225_v20 = vpop.f32.mrf.mxu0 }
 0x5e6   : > { %v1226_v23 = vadd.f32 %v1539_v21, %v1225_v20  ;;  %v1242_v32 = vadd.f32 %v1234_v25, %v2226_v53 }
 0x5e7   : > { %v1757_v22 = vpop.f32.mrf.mxu0 }
 0x5e8   : > { %v1237_v24 = vadd.f32 %v1757_v22, %v1539_v21  ;;  %v1240_v30 = vadd.f32 %v1226_v23, %v2229_v54 }
 0x5e9   : > { %v1228_v26 = vpop.f32.mrf.mxu0 }
 0x5ea   : > { %v1229_v27 = vadd.f32 %v1539_v21, %v1228_v26  ;;  %v1243_v29 = vadd.f32 %v1237_v24, %v2223_v51 }
 0x5ec   : > { %v1241_v31 = vadd.f32 %v1229_v27, %v2232_v55  ;;  %v1245_v34 = vpack.c.bf16 %v1243_v29, %v1242_v32 }
 0x5ee   : > { %v1244_v33 = vpack.c.bf16 %v1241_v31, %v1240_v30 }
 0x5f0   : > { %1774 = vmatprep.mubr.bf16.mxu1 %v1244_v33 }
 0x5f1   : > { %1775 = vmatmul.mubr.bf16.vlgmr.msra.gmra.mxu1 %v1245_v34 }
 0x6b1   : > { %v1776_v35 = vpop.f32.mrf.mxu1 }
 0x6b2   : > { %v1360_v42 = vadd.f32 %v1776_v35, %v1548_v36 }
 0x6b3   : > { %v1351_v37 = vpop.f32.mrf.mxu1 }
 0x6b4   : > { %v1352_v38 = vadd.f32 %v1548_v36, %v1351_v37  ;;  %1368 = vst [vmem:[%s389_s25 + $0x10] sm:$0xff] %v1360_v42 }
 0x6b5   : > { %v1777_v39 = vpop.f32.mrf.mxu1 }
 0x6b6   : > { %1366 = vst [vmem:[%s389_s25] sm:$0xff] %v1352_v38  ;;  %v1363_v43 = vadd.f32 %v1777_v39, %v1548_v36 }
 0x6b7   : > { %v1354_v40 = vpop.f32.mrf.mxu1 }
 0x6b8   : > { %v1355_v41 = vadd.f32 %v1548_v36, %v1354_v40  ;;  %1369 = vst [vmem:[%s389_s25 + $0x18] sm:$0xff] %v1363_v43 }
 0x6ba   : > { %1367 = vst [vmem:[%s389_s25 + $0x8] sm:$0xff] %v1355_v41 }
 0x6bb PF: > { %s22_s30 = sadd.s32 1, %s2012_s30  }
 0x6bc   : > { %p19_p2 = scmp.ge.s32.totalorder %s22_s30, 4  }
 0x6be   :  { %21 = sbr.rel (!%p19_p2) target bundleno = 3 (0x3), region = 111 }
 0x6c3   :  { %1392 = vsyncpa [#allocation3], 1 }
 0x6c4   :  { %1394 = vsyncpa [#allocation3 + $0x1], 1 }
 0x6c5   :  { %1395 = vsyncpa [#allocation5], 1 }
 0x6c6   :  { %1396 = vsyncpa [#allocation8], 1 }

</bundles_post_ra>
